<compile_context>
chip_gen: v5e
topology: v5e:2x2
jax: 0.10.0
libtpu: 0.0.40
codegen_flags: <defaults>
</compile_context>

<pallas_src>
import functools

import jax
import jax.numpy as jnp
from jax.experimental import pallas as pl
from jax.experimental.pallas import tpu as pltpu

EMB = 768
NUM_CLASSES = 101
C_PAD = 128                      # class dim padded to one full lane width
_NEG_INF = float("-inf")


def _ceil_div(a, b):
    return -(-a // b)


def _round_up(a, m):
    return _ceil_div(a, m) * m


# ---------- generation-aware tiling config (resolved once at import) ----------
def _detect_generation():
    try:
        kind = jax.devices()[0].device_kind.lower().replace(" ", "")
    except Exception:
        kind = ""
    if "v7" in kind or "tpu7" in kind:
        return 7
    if "v6" in kind:
        return 6
    if "v5e" in kind or "v5lite" in kind:
        return 5
    return 0


_GEN = _detect_generation()
if _GEN == 7:
    # ~3.2 TB/s HBM, 64 MiB physical VMEM, 2 TensorCores.
    _TILE_TARGET_BYTES = 8 << 20
    _VMEM_LIMIT_BYTES = 48 << 20
    _MIN_BATCH_STEPS = 2          # engage both TCs via the "parallel" batch axis
elif _GEN == 6:
    _TILE_TARGET_BYTES = 6 << 20
    _VMEM_LIMIT_BYTES = 64 << 20
    _MIN_BATCH_STEPS = 1
else:                             # v5e and unknown generations: conservative
    _TILE_TARGET_BYTES = 4 << 20
    _VMEM_LIMIT_BYTES = 32 << 20
    _MIN_BATCH_STEPS = 1


def _choose_tiles(B, T, itemsize, tile_target_bytes):
    """Return (bb, tt): batch rows / tokens per (bb, tt, EMB) x tile."""
    row_bytes = EMB * itemsize                 # one token of one batch row
    # second-minor alignment of the x block for sub-32-bit dtypes
    t_align = 8 if itemsize >= 4 else (16 if itemsize == 2 else 32)
    target = max(tile_target_bytes, 8 * t_align * row_bytes)

    if 8 * T * row_bytes <= target:
        # Short / medium T: whole token axis in one tile; block over batch only.
        tt = T
        bb_cap = max(8, (target // (T * row_bytes)) // 8 * 8)
        min_steps = _MIN_BATCH_STEPS if B >= 16 else 1
        if B <= bb_cap and min_steps <= 1:
            return B, tt                       # one full-batch block (block == dim)
        steps = max(min_steps, _ceil_div(B, bb_cap))
        return _round_up(_ceil_div(B, steps), 8), tt   # even split, sublane aligned
    # Long T: fix bb at 8 rows and tile the token axis (running accumulators).
    tt = max(t_align, (target // (8 * row_bytes)) // t_align * t_align)
    return 8, min(tt, T)


# ------------------------------- kernels --------------------------------------
def _classify(pooled_f32, w_ref, b_ref, o_ref):
    # pooled: (bb, EMB) f32; w: (EMB, C_PAD); b: (1, C_PAD); o: (bb, C_PAD)
    out = jnp.dot(pooled_f32, w_ref[...],
                  preferred_element_type=jnp.float32) + b_ref[...]
    o_ref[...] = out.astype(o_ref.dtype)


def _t_valid_mask(t_block, t_total):
    # (1, t_block, 1) bool: True for in-range token positions of this T block.
    j = pl.program_id(1)
    tid = jax.lax.broadcasted_iota(jnp.int32, (1, t_block, 1), 1)
    return tid < (t_total - j * t_block)


def _avg_kernel(x_ref, w_ref, b_ref, o_ref, acc_ref, *, t_total, t_block, t_mask):
    j = pl.program_id(1)

    @pl.when(j == 0)
    def _init():
        acc_ref[...] = jnp.zeros(acc_ref.shape, acc_ref.dtype)

    x = x_ref[...].astype(jnp.float32)                      # (bb, tt, EMB)
    if t_mask:
        x = jnp.where(_t_valid_mask(t_block, t_total), x, 0.0)
    acc_ref[...] += jnp.sum(x, axis=1)

    @pl.when(j == pl.num_programs(1) - 1)
    def _fin():
        _classify(acc_ref[...] * (1.0 / t_total), w_ref, b_ref, o_ref)


def _max_kernel(x_ref, w_ref, b_ref, o_ref, acc_ref, *, t_total, t_block, t_mask):
    j = pl.program_id(1)

    @pl.when(j == 0)
    def _init():
        acc_ref[...] = jnp.full(acc_ref.shape, _NEG_INF, acc_ref.dtype)

    x = x_ref[...].astype(jnp.float32)
    if t_mask:
        x = jnp.where(_t_valid_mask(t_block, t_total), x, _NEG_INF)
    acc_ref[...] = jnp.maximum(acc_ref[...], jnp.max(x, axis=1))

    @pl.when(j == pl.num_programs(1) - 1)
    def _fin():
        _classify(acc_ref[...], w_ref, b_ref, o_ref)


def _attn_kernel(x_ref, q_ref, w_ref, b_ref, o_ref, m_ref, l_ref, acc_ref, *,
                 t_total, t_block, t_mask):
    j = pl.program_id(1)

    @pl.when(j == 0)
    def _init():
        m_ref[...] = jnp.full(m_ref.shape, _NEG_INF, m_ref.dtype)
        l_ref[...] = jnp.zeros(l_ref.shape, l_ref.dtype)
        acc_ref[...] = jnp.zeros(acc_ref.shape, acc_ref.dtype)

    x = x_ref[...].astype(jnp.float32)                      # (bb, tt, EMB)
    q = q_ref[...].astype(jnp.float32)                      # (1, EMB)
    # scores z = x @ q.T on the VPU (mul) + XLU (lane reduce): no N=1 MXU matmul.
    z = jnp.sum(x * q, axis=-1, keepdims=True)              # (bb, tt, 1)
    if t_mask:
        valid = _t_valid_mask(t_block, t_total)
        z = jnp.where(valid, z, _NEG_INF)                    # padded tokens: weight 0
        x = jnp.where(valid, x, 0.0)                         # and no acc contribution
    # online softmax over the token axis
    m_prev = m_ref[...]                                      # (bb, 1, 1)
    m_new = jnp.maximum(m_prev, jnp.max(z, axis=1, keepdims=True))
    alpha = jnp.exp(m_prev - m_new)                          # rescale prior partials
    p = jnp.exp(z - m_new)                                   # (bb, tt, 1)
    l_ref[...] = alpha * l_ref[...] + jnp.sum(p, axis=1, keepdims=True)
    acc_ref[...] = alpha * acc_ref[...] + jnp.sum(p * x, axis=1, keepdims=True)
    m_ref[...] = m_new

    @pl.when(j == pl.num_programs(1) - 1)
    def _fin():
        pooled3 = acc_ref[...] * pl.reciprocal(l_ref[...], approx=False)  # (bb,1,E)
        _classify(jnp.sum(pooled3, axis=1), w_ref, b_ref, o_ref)


# ------------------------------- wrapper ---------------------------------------
@functools.partial(jax.jit, static_argnames=("method", "tile_bytes"))
def intent_classifier_forward(x, q, w, b, *, method="average", tile_bytes=None):
    """x: (B, T, 768) f32 or bf16; q: (1, 768); w: (768, 101); b: (101,)."""
    B, T, E = x.shape
    if E != EMB:
        raise ValueError(f"expected embedding size {EMB}, got {E}")

    itemsize = jnp.dtype(x.dtype).itemsize
    bb, tt = _choose_tiles(B, T, itemsize, tile_bytes or _TILE_TARGET_BYTES)
    nb, nt = _ceil_div(B, bb), _ceil_div(T, tt)
    b_rows = nb * bb              # output rows padded so every store is in-bounds
    t_mask = (T % tt) != 0        # static: only mask when the last T block is partial

    # Classifier params padded to a full 128-lane slab (extra logits have zero
    # weight/bias and are sliced away). Tiny; fuses under jit.
    w_pad = jnp.zeros((EMB, C_PAD), jnp.float32).at[:, :NUM_CLASSES].set(
        w.astype(jnp.float32))
    b_pad = jnp.zeros((1, C_PAD), jnp.float32).at[0, :NUM_CLASSES].set(
        b.astype(jnp.float32))

    # NOTE: x is NOT padded/copied. The last batch / token block may read
    # out-of-bounds rows; those only feed logits dropped by the [:B] slice, and
    # the T mask keeps padded tokens out of every pooling reduction.
    x_spec = pl.BlockSpec((bb, tt, EMB), lambda i, j: (i, j, 0))
    w_spec = pl.BlockSpec((EMB, C_PAD), lambda i, j: (0, 0))
    b_spec = pl.BlockSpec((1, C_PAD), lambda i, j: (0, 0))
    out_spec = pl.BlockSpec((bb, C_PAD), lambda i, j: (i, 0))

    static = dict(t_total=T, t_block=tt, t_mask=t_mask)
    if method == "self_attention":
        kernel = functools.partial(_attn_kernel, **static)
        in_specs = [x_spec, pl.BlockSpec((1, EMB), lambda i, j: (0, 0)), w_spec, b_spec]
        args = (x, q.astype(jnp.float32), w_pad, b_pad)
        scratch = [pltpu.VMEM((bb, 1, 1), jnp.float32),       # running max m
                   pltpu.VMEM((bb, 1, 1), jnp.float32),       # running denom l
                   pltpu.VMEM((bb, 1, EMB), jnp.float32)]     # running weighted sum
    elif method == "average":
        kernel = functools.partial(_avg_kernel, **static)
        in_specs = [x_spec, w_spec, b_spec]                   # q DMA skipped entirely
        args = (x, w_pad, b_pad)
        scratch = [pltpu.VMEM((bb, EMB), jnp.float32)]
    elif method == "max":
        kernel = functools.partial(_max_kernel, **static)
        in_specs = [x_spec, w_spec, b_spec]                   # q DMA skipped entirely
        args = (x, w_pad, b_pad)
        scratch = [pltpu.VMEM((bb, EMB), jnp.float32)]
    else:
        raise ValueError(f"unknown method: {method}")

    out_pad = pl.pallas_call(
        kernel,
        out_shape=jax.ShapeDtypeStruct((b_rows, C_PAD), jnp.float32),
        grid_spec=pltpu.PrefetchScalarGridSpec(
            num_scalar_prefetch=0,
            grid=(nb, nt),                      # batch parallel, token reduction last
            in_specs=in_specs,
            out_specs=out_spec,
            scratch_shapes=scratch,
        ),
        compiler_params=pltpu.CompilerParams(
            dimension_semantics=("parallel", "arbitrary"),
            vmem_limit_bytes=_VMEM_LIMIT_BYTES,
        ),
    )(*args)

    # (b_rows, 128) lane-dense slab -> (B, 1, 101), matching the PyTorch output.
    return out_pad[:B, :NUM_CLASSES].reshape(B, 1, NUM_CLASSES)


def intent_classifier_ref(x, q, w, b, *, method="average"):
    """Pure-JAX reference mirroring the PyTorch forward."""
    x = x.astype(jnp.float32)
    if method == "average":
        pooled = jnp.mean(x, axis=1, keepdims=True)
    elif method == "max":
        pooled = jnp.max(x, axis=1, keepdims=True)
    else:
        z = jnp.einsum("bte,oe->bto", x, q)                  # (B, T, 1)
        alpha = jax.nn.softmax(z, axis=1)
        pooled = jnp.einsum("bto,bte->boe", alpha, x)        # (B, 1, E)
    return pooled @ w + b                                    # (B, 1, 101)


if __name__ == "__main__":
    key = jax.random.PRNGKey(0)
    k_x, k_q, k_w, k_b = jax.random.split(key, 4)

    B, T = 2, 8
    x = jax.random.normal(k_x, (B, T, EMB), jnp.float32)

    # Deterministic synthetic parameters (shapes from the module's __init__).
    q = jax.random.normal(k_q, (1, EMB), jnp.float32) * 0.001               # query
    w_lin = jax.random.normal(k_w, (NUM_CLASSES, EMB), jnp.float32) * 0.02  # Linear.weight
    b_lin = jax.random.normal(k_b, (NUM_CLASSES,), jnp.float32) * 0.02      # Linear.bias
    w = w_lin.T                                                             # (EMB, 101)

    ok = True

    # 1) f32 streaming, single-block fast path.
    for method in ("average", "max", "self_attention"):
        out = jax.block_until_ready(
            intent_classifier_forward(x, q, w, b_lin, method=method))
        ref = intent_classifier_ref(x, q, w, b_lin, method=method)
        assert out.shape == (B, 1, NUM_CLASSES), out.shape
        ok &= bool(jnp.allclose(out, ref, atol=1e-4, rtol=1e-4))

    # 2) bf16-streamed activations (halved HBM bytes; compute stays f32 in-kernel).
    x_bf16 = x.astype(jnp.bfloat16)
    for method in ("average", "max", "self_attention"):
        out = jax.block_until_ready(
            intent_classifier_forward(x_bf16, q, w, b_lin, method=method))
        ref = intent_classifier_ref(x, q, w, b_lin, method=method)
        ok &= bool(jnp.allclose(out, ref, atol=3e-2, rtol=3e-2))

    # 3) Multi-block path: partial (OOB) last batch block + T tiling with masked
    #    tail, forced at small shapes via a tiny tile budget.
    B2, T2 = 10, 20
    x2 = jax.random.normal(jax.random.PRNGKey(1), (B2, T2, EMB), jnp.float32)
    tiny_tile = 8 * 8 * EMB * 4
    for method in ("average", "max", "self_attention"):
        out = jax.block_until_ready(
            intent_classifier_forward(x2, q, w, b_lin, method=method,
                                      tile_bytes=tiny_tile))
        ref = intent_classifier_ref(x2, q, w, b_lin, method=method)
        assert out.shape == (B2, 1, NUM_CLASSES), out.shape
        ok &= bool(jnp.allclose(out, ref, atol=1e-4, rtol=1e-4))

    if ok:
        print("KERNEL_OK")
</pallas_src>

<mosaic_0001>
module attributes {stable_mosaic.version = 11 : i64} {
  func.func @_avg_kernel(%arg0: i32, %arg1: i32, %arg2: memref<2x8x768xf32, #tpu.memory_space<vmem>>, %arg3: memref<768x128xf32, #tpu.memory_space<vmem>>, %arg4: memref<1x128xf32, #tpu.memory_space<vmem>>, %arg5: memref<2x128xf32, #tpu.memory_space<vmem>>, %arg6: memref<2x768xf32, #tpu.memory_space<vmem>>) attributes {dimension_semantics = [#tpu.dimension_semantics<parallel>, #tpu.dimension_semantics<arbitrary>], iteration_bounds = array<i64: 1, 1>, scalar_prefetch = 0 : i64, scratch_operands = 1 : i64, tpu.core_type = #tpu.core_type<tc>, window_params = [{transform_indices = @transform_0, window_bounds = array<i64: 2, 8, 768>}, {pipeline_mode = #tpu.pipeline_mode<synchronous>, transform_indices = @transform_1, window_bounds = array<i64: 768, 128>}, {pipeline_mode = #tpu.pipeline_mode<synchronous>, transform_indices = @transform_2, window_bounds = array<i64: 1, 128>}, {transform_indices = @transform_3, window_bounds = array<i64: 2, 128>}]} {
    %c0_i32 = arith.constant 0 : i32
    %0 = arith.cmpi eq, %arg1, %c0_i32 : i32
    %1 = arith.extui %0 : i1 to i32
    %c0_i32_0 = arith.constant 0 : i32
    %2 = arith.cmpi ne, %1, %c0_i32_0 : i32
    scf.if %2 {
      %cst_9 = arith.constant 0.000000e+00 : f32
      %11 = vector.broadcast %cst_9 : f32 to vector<2x768xf32>
      %c0_10 = arith.constant 0 : index
      %c0_11 = arith.constant 0 : index
      %12 = vector.load %arg6[%c0_10, %c0_11] : memref<2x768xf32, #tpu.memory_space<vmem>>, vector<2x768xf32>
      tpu.vector_store %arg6[%c0_10, %c0_11], %11 {strides = array<i32>} : memref<2x768xf32, #tpu.memory_space<vmem>>, vector<2x768xf32>,
    } else {
    }
    %c0 = arith.constant 0 : index
    %c0_1 = arith.constant 0 : index
    %c0_2 = arith.constant 0 : index
    %3 = vector.load %arg2[%c0, %c0_1, %c0_2] : memref<2x8x768xf32, #tpu.memory_space<vmem>>, vector<2x8x768xf32>
    %c0_3 = arith.constant 0 : index
    %c0_4 = arith.constant 0 : index
    %4 = vector.load %arg6[%c0_3, %c0_4] : memref<2x768xf32, #tpu.memory_space<vmem>>, vector<2x768xf32>
    %cst = arith.constant dense<0.000000e+00> : vector<2x768xf32>
    %5 = vector.multi_reduction <add>, %3, %cst [1] : vector<2x8x768xf32> to vector<2x768xf32>
    %6 = arith.addf %4, %5 : vector<2x768xf32>
    %c0_5 = arith.constant 0 : index
    %c0_6 = arith.constant 0 : index
    %7 = vector.load %arg6[%c0_5, %c0_6] : memref<2x768xf32, #tpu.memory_space<vmem>>, vector<2x768xf32>
    tpu.vector_store %arg6[%c0_5, %c0_6], %6 {strides = array<i32>} : memref<2x768xf32, #tpu.memory_space<vmem>>, vector<2x768xf32>,
    %c0_i32_7 = arith.constant 0 : i32
    %8 = arith.cmpi eq, %arg1, %c0_i32_7 : i32
    %9 = arith.extui %8 : i1 to i32
    %c0_i32_8 = arith.constant 0 : i32
    %10 = arith.cmpi ne, %9, %c0_i32_8 : i32
    scf.if %10 {
      %c0_9 = arith.constant 0 : index
      %c0_10 = arith.constant 0 : index
      %11 = vector.load %arg6[%c0_9, %c0_10] : memref<2x768xf32, #tpu.memory_space<vmem>>, vector<2x768xf32>
      %cst_11 = arith.constant 1.250000e-01 : f32
      %12 = vector.broadcast %cst_11 : f32 to vector<2x768xf32>
      %13 = arith.mulf %11, %12 : vector<2x768xf32>
      %c0_12 = arith.constant 0 : index
      %c0_13 = arith.constant 0 : index
      %14 = vector.load %arg3[%c0_12, %c0_13] : memref<768x128xf32, #tpu.memory_space<vmem>>, vector<768x128xf32>
      %cst_14 = arith.constant dense<0.000000e+00> : vector<2x128xf32>
      %15 = tpu.matmul %13, %14, %cst_14 {dimension_numbers = #tpu.dot_dimension_numbers<[1], [0], [0], [1], [0, 0, 1, 1], [], []>} : vector<2x768xf32>, vector<768x128xf32>, vector<2x128xf32> -> vector<2x128xf32>
      %c0_15 = arith.constant 0 : index
      %c0_16 = arith.constant 0 : index
      %16 = vector.load %arg4[%c0_15, %c0_16] : memref<1x128xf32, #tpu.memory_space<vmem>>, vector<1x128xf32>
      %17 = vector.broadcast %16 : vector<1x128xf32> to vector<2x128xf32>
      %18 = arith.addf %15, %17 : vector<2x128xf32>
      %c0_17 = arith.constant 0 : index
      %c0_18 = arith.constant 0 : index
      %19 = vector.load %arg5[%c0_17, %c0_18] : memref<2x128xf32, #tpu.memory_space<vmem>>, vector<2x128xf32>
      tpu.vector_store %arg5[%c0_17, %c0_18], %18 {strides = array<i32>} : memref<2x128xf32, #tpu.memory_space<vmem>>, vector<2x128xf32>,
    } else {
    }
    return
  }
  func.func @transform_0(%arg0: i32, %arg1: i32) -> (i32, i32, i32) {
    %c0_i32 = arith.constant 0 : i32
    %c0_i32_0 = arith.constant 0 : i32
    return %arg0, %arg1, %c0_i32 : i32, i32, i32
  }
  func.func @transform_1(%arg0: i32, %arg1: i32) -> (i32, i32) {
    %c0_i32 = arith.constant 0 : i32
    %c0_i32_0 = arith.constant 0 : i32
    %c0_i32_1 = arith.constant 0 : i32
    return %c0_i32, %c0_i32_0 : i32, i32
  }
  func.func @transform_2(%arg0: i32, %arg1: i32) -> (i32, i32) {
    %c0_i32 = arith.constant 0 : i32
    %c0_i32_0 = arith.constant 0 : i32
    %c0_i32_1 = arith.constant 0 : i32
    return %c0_i32, %c0_i32_0 : i32, i32
  }
  func.func @transform_3(%arg0: i32, %arg1: i32) -> (i32, i32) {
    %c0_i32 = arith.constant 0 : i32
    %c0_i32_0 = arith.constant 0 : i32
    return %arg0, %c0_i32 : i32, i32
  }
}

</mosaic_0001>

<bundles_post_ra>
// kernel: intent_classifier_forward.1
= control target key start
LH: loop header
LB: loop body
LE: loop exit
PB: predicated region body
PF: predicated region fallthrough
CT: control target
= control target key end

     0   :  { %v454_v6 = vmov 0.0   ;;  %vm127_vm0 = vcmask 1041408   ;;  %s822_s0 = inlined_call_operand.vmem [shape: f32[2,8,768], index: 0, kind: input, shape index: {}]   ;;  %s823_s1 = inlined_call_operand.vmem [shape: f32[768,128], index: 1, kind: input, shape index: {}]   ;;  %s824_s2 = inlined_call_operand.vmem [shape: f32[1,128], index: 2, kind: input, shape index: {}]   ;;  %s825_s3 = inlined_call_operand.hbm [shape: f32[2,128], index: 3, kind: output, shape index: {}]  }
   0x1   :  { %v186_v0 = vld [vmem:[%s823_s1 + $0x78] sm:$0xff]  ;;  %v185_v1 = vld [vmem:[%s823_s1 + $0x70] sm:$0xff]  ;;  %v184_v4 = vld [vmem:[%s823_s1 + $0x68] sm:$0xff]  ;;  %20 = vst [vmem:[#allocation2 + $0x8] sm:$0xf] %v454_v6 }
   0x2   :  { %v202_v2 = vld [vmem:[%s823_s1 + $0xf8] sm:$0xff]  ;;  %288 = vmatpush.msra.mxu0 %v186_v0  ;;  %v201_v3 = vld [vmem:[%s823_s1 + $0xf0] sm:$0xff]  ;;  %v200_v5 = vld [vmem:[%s823_s1 + $0xe8] sm:$0xff] }
   0x3   :  { %308 = vmatpush.msra.mxu1 %v202_v2  ;;  %v183_v7 = vld [vmem:[%s823_s1 + $0x60] sm:$0xff]  ;;  %v182_v9 = vld [vmem:[%s823_s1 + $0x58] sm:$0xff]  ;;  %v181_v11 = vld [vmem:[%s823_s1 + $0x50] sm:$0xff] }
   0x4   :  { %289 = vmatpush.msra.mxu0 %v185_v1  ;;  %v199_v8 = vld [vmem:[%s823_s1 + $0xe0] sm:$0xff]  ;;  %v198_v10 = vld [vmem:[%s823_s1 + $0xd8] sm:$0xff]  ;;  %v197_v13 = vld [vmem:[%s823_s1 + $0xd0] sm:$0xff] }
   0x5   :  { %309 = vmatpush.msra.mxu1 %v201_v3  ;;  %v218_v12 = vld [vmem:[%s823_s1 + $0x178] sm:$0xff]  ;;  %v217_v14 = vld [vmem:[%s823_s1 + $0x170] sm:$0xff]  ;;  %v216_v16 = vld [vmem:[%s823_s1 + $0x168] sm:$0xff] }
   0x6   :  { %290 = vmatpush.msra.mxu0 %v184_v4  ;;  %328 = vmatpush.msra.mxu2 %v218_v12  ;;  %v234_v15 = vld [vmem:[%s823_s1 + $0x1f8] sm:$0xff]  ;;  %v233_v17 = vld [vmem:[%s823_s1 + $0x1f0] sm:$0xff]  ;;  %v180_v18 = vld [vmem:[%s823_s1 + $0x48] sm:$0xff] }
   0x7   :  { %310 = vmatpush.msra.mxu1 %v200_v5  ;;  %v196_v19 = vld [vmem:[%s823_s1 + $0xc8] sm:$0xff]  ;;  %348 = vmatpush.msra.mxu3 %v234_v15  ;;  %v215_v20 = vld [vmem:[%s823_s1 + $0x160] sm:$0xff]  ;;  %v214_v24 = vld [vmem:[%s823_s1 + $0x158] sm:$0xff] }
   0x8   :  { %291 = vmatpush.msra.mxu0 %v183_v7  ;;  %329 = vmatpush.msra.mxu2 %v217_v14  ;;  %v232_v21 = vld [vmem:[%s823_s1 + $0x1e8] sm:$0xff]  ;;  %v179_v22 = vld [vmem:[%s823_s1 + $0x40] sm:$0xff]  ;;  %v178_v26 = vld [vmem:[%s823_s1 + $0x38] sm:$0xff] }
   0x9   :  { %311 = vmatpush.msra.mxu1 %v199_v8  ;;  %v195_v23 = vld [vmem:[%s823_s1 + $0xc0] sm:$0xff]  ;;  %349 = vmatpush.msra.mxu3 %v233_v17  ;;  %v194_v27 = vld [vmem:[%s823_s1 + $0xb8] sm:$0xff]  ;;  %v213_v28 = vld [vmem:[%s823_s1 + $0x150] sm:$0xff] }
   0xa   :  { %292 = vmatpush.msra.mxu0 %v182_v9  ;;  %330 = vmatpush.msra.mxu2 %v216_v16  ;;  %v231_v25 = vld [vmem:[%s823_s1 + $0x1e0] sm:$0xff]  ;;  %v230_v29 = vld [vmem:[%s823_s1 + $0x1d8] sm:$0xff]  ;;  %v177_v30 = vld [vmem:[%s823_s1 + $0x30] sm:$0xff] }
   0xb   :  { %312 = vmatpush.msra.mxu1 %v198_v10  ;;  %350 = vmatpush.msra.mxu3 %v232_v21  ;;  %v193_v31 = vld [vmem:[%s823_s1 + $0xb0] sm:$0xff]  ;;  %v212_v32 = vld [vmem:[%s823_s1 + $0x148] sm:$0xff]  ;;  %v211_v36 = vld [vmem:[%s823_s1 + $0x140] sm:$0xff] }
   0xc   :  { %293 = vmatpush.msra.mxu0 %v181_v11  ;;  %331 = vmatpush.msra.mxu2 %v215_v20  ;;  %v229_v33 = vld [vmem:[%s823_s1 + $0x1d0] sm:$0xff]  ;;  %v176_v34 = vld [vmem:[%s823_s1 + $0x28] sm:$0xff]  ;;  %v175_v38 = vld [vmem:[%s823_s1 + $0x20] sm:$0xff] }
   0xd   :  { %313 = vmatpush.msra.mxu1 %v197_v13  ;;  %351 = vmatpush.msra.mxu3 %v231_v25  ;;  %v192_v35 = vld [vmem:[%s823_s1 + $0xa8] sm:$0xff]  ;;  %v191_v39 = vld [vmem:[%s823_s1 + $0xa0] sm:$0xff]  ;;  %v210_v40 = vld [vmem:[%s823_s1 + $0x138] sm:$0xff] }
   0xe   :  { %294 = vmatpush.msra.mxu0 %v180_v18  ;;  %332 = vmatpush.msra.mxu2 %v214_v24  ;;  %v228_v37 = vld [vmem:[%s823_s1 + $0x1c8] sm:$0xff]  ;;  %v227_v41 = vld [vmem:[%s823_s1 + $0x1c0] sm:$0xff]  ;;  %v174_v42 = vld [vmem:[%s823_s1 + $0x18] sm:$0xff] }
   0xf   :  { %314 = vmatpush.msra.mxu1 %v196_v19  ;;  %352 = vmatpush.msra.mxu3 %v230_v29  ;;  %v190_v43 = vld [vmem:[%s823_s1 + $0x98] sm:$0xff]  ;;  %v209_v44 = vld [vmem:[%s823_s1 + $0x130] sm:$0xff]  ;;  %v172_v48 = vld [vmem:[%s823_s1 + $0x8] sm:$0xff] }
  0x10   :  { %295 = vmatpush.msra.mxu0 %v179_v22  ;;  %333 = vmatpush.msra.mxu2 %v213_v28  ;;  %v226_v45 = vld [vmem:[%s823_s1 + $0x1b8] sm:$0xff]  ;;  %v173_v46 = vld [vmem:[%s823_s1 + $0x10] sm:$0xff]  ;;  %v208_v49 = vld [vmem:[%s823_s1 + $0x128] sm:$0xff] }
  0x11   :  { %315 = vmatpush.msra.mxu1 %v195_v23  ;;  %353 = vmatpush.msra.mxu3 %v229_v33  ;;  %v189_v47 = vld [vmem:[%s823_s1 + $0x90] sm:$0xff]  ;;  %v171_v51 = vld [vmem:[%s823_s1] sm:$0xff]  ;;  %v188_v52 = vld [vmem:[%s823_s1 + $0x88] sm:$0xff] }
  0x12   :  { %296 = vmatpush.msra.mxu0 %v178_v26  ;;  %334 = vmatpush.msra.mxu2 %v212_v32  ;;  %v225_v50 = vld [vmem:[%s823_s1 + $0x1b0] sm:$0xff]  ;;  %v187_v53 = vld [vmem:[%s823_s1 + $0x80] sm:$0xff]  ;;  %v250_v54 = vld [vmem:[%s823_s1 + $0x278] sm:$0xff] }
  0x13   :  { %316 = vmatpush.msra.mxu1 %v194_v27  ;;  %354 = vmatpush.msra.mxu3 %v228_v37  ;;  %v266_v55 = vld [vmem:[%s823_s1 + $0x2f8] sm:$0xff]  ;;  %v207_v56 = vld [vmem:[%s823_s1 + $0x120] sm:$0xff]  ;;  %v224_v57 = vld [vmem:[%s823_s1 + $0x1a8] sm:$0xff] }
  0x14   :  { %297 = vmatpush.msra.mxu0 %v177_v30  ;;  %335 = vmatpush.msra.mxu2 %v211_v36  ;;  %v206_v58 = vld [vmem:[%s823_s1 + $0x118] sm:$0xff]  ;;  %v21_v59 = vld [vmem:[%s822_s0] sm:$0xff]  ;;  %v22_v60 = vld [vmem:[%s822_s0 + $0x8] sm:$0xff] }
  0x15   :  { %317 = vmatpush.msra.mxu1 %v193_v31  ;;  %355 = vmatpush.msra.mxu3 %v227_v41  ;;  %v23_v61 = vld [vmem:[%s822_s0 + $0x10] sm:$0xff]  ;;  %v24_v62 = vld [vmem:[%s822_s0 + $0x18] sm:$0xff]  ;;  %v35_v1 = vrot.slane %v21_v59, 4  ;;  %v41_v2 = vrot.slane %v22_v60, 4  ;;  %v223_v4 = vld [vmem:[%s823_s1 + $0x1a0] sm:$0xff] }
  0x16   :  { %298 = vmatpush.msra.mxu0 %v176_v34  ;;  %336 = vmatpush.msra.mxu2 %v210_v40  ;;  %v27_v63 = vld [vmem:[%s822_s0 + $0x30] sm:$0xff]  ;;  %v28_v0 = vld [vmem:[%s822_s0 + $0x38] sm:$0xff]  ;;  %v47_v3 = vrot.slane %v23_v61, 4  ;;  %v29_v5 = vld [vmem:[%s822_s0 + $0x40] sm:$0xff]  ;;  %v53_v7 = vrot.slane %v24_v62, 4 }
  0x17   :  { %318 = vmatpush.msra.mxu1 %v192_v35  ;;  %356 = vmatpush.msra.mxu3 %v226_v45  ;;  %v30_v6 = vld [vmem:[%s822_s0 + $0x48] sm:$0xff]  ;;  %v71_v8 = vrot.slane %v27_v63, 4  ;;  %v77_v9 = vrot.slane %v28_v0, 4  ;;  %v249_v10 = vld [vmem:[%s823_s1 + $0x270] sm:$0xff]  ;;  %v36_v13 = vadd.f32 %v35_v1, %v21_v59  ;;  %v42_v14 = vadd.f32 %v41_v2, %v22_v60  ;;  %v222_v18 = vld [vmem:[%s823_s1 + $0x198] sm:$0xff] }
  0x18   :  { %299 = vmatpush.msra.mxu0 %v175_v38  ;;  %337 = vmatpush.msra.mxu2 %v209_v44  ;;  %v248_v11 = vld [vmem:[%s823_s1 + $0x268] sm:$0xff]  ;;  %v265_v12 = vld [vmem:[%s823_s1 + $0x2f0] sm:$0xff]  ;;  %v48_v15 = vadd.f32 %v47_v3, %v23_v61  ;;  %v83_v16 = vrot.slane %v29_v5, 4  ;;  %v54_v19 = vadd.f32 %v53_v7, %v24_v62  ;;  %v89_v22 = vrot.slane %v30_v6, 4 }
  0x19   :  { %319 = vmatpush.msra.mxu1 %v191_v39  ;;  %357 = vmatpush.msra.mxu3 %v225_v50  ;;  %v205_v17 = vld [vmem:[%s823_s1 + $0x110] sm:$0xff]  ;;  %v72_v20 = vadd.f32 %v71_v8, %v27_v63  ;;  %v78_v21 = vadd.f32 %v77_v9, %v28_v0  ;;  %v264_v23 = vld [vmem:[%s823_s1 + $0x2e8] sm:$0xff]  ;;  %v37_v24 = vrot.slane %v36_v13, 2  ;;  %v43_v25 = vrot.slane %v42_v14, 2 }
  0x1a   :  { %300 = vmatpush.msra.mxu0 %v174_v42  ;;  %338 = vmatpush.msra.mxu2 %v208_v49  ;;  %v49_v26 = vrot.slane %v48_v15, 2  ;;  %v84_v27 = vadd.f32 %v83_v16, %v29_v5 }
  0x1b   :  { %320 = vmatpush.msra.mxu1 %v190_v43  ;;  %358 = vmatpush.msra.mxu3 %v224_v57 }
  0x1c   :  { %301 = vmatpush.msra.mxu0 %v173_v46  ;;  %339 = vmatpush.msra.mxu2 %v207_v56 }
  0x1d   :  { %321 = vmatpush.msra.mxu1 %v189_v47  ;;  %359 = vmatpush.msra.mxu3 %v223_v4 }
  0x1e   :  { %302 = vmatpush.msra.mxu0 %v172_v48  ;;  %340 = vmatpush.msra.mxu2 %v206_v58 }
  0x1f   :  { %322 = vmatpush.msra.mxu1 %v188_v52 }
  0x20   :  { %303 = vmatpush.msra.mxu0 %v171_v51 }
  0x21   :  { %323 = vmatpush.msra.mxu1 %v187_v53 }
  0x22   :  { %368 = vmatpush.msrb.mxu0 %v250_v54 }
  0x23   :  { %388 = vmatpush.msrb.mxu1 %v266_v55 }
  0x24   :  { %8 = vsyncpa [#allocation4], 0  ;;  %369 = vmatpush.msrb.mxu0 %v249_v10  ;;  %v204_v28 = vld [vmem:[%s823_s1 + $0x108] sm:$0xff]  ;;  %v221_v29 = vld [vmem:[%s823_s1 + $0x190] sm:$0xff]  ;;  %v55_v30 = vrot.slane %v54_v19, 2  ;;  %v73_v31 = vrot.slane %v72_v20, 2  ;;  %v90_v33 = vadd.f32 %v89_v22, %v30_v6  ;;  %341 = vmatpush.msra.mxu2 %v205_v17  ;;  %v38_v36 = vadd.f32 %v37_v24, %v36_v13 }
  0x25   :  { %389 = vmatpush.msrb.mxu1 %v265_v12  ;;  %v79_v32 = vrot.slane %v78_v21, 2  ;;  %v247_v34 = vld [vmem:[%s823_s1 + $0x260] sm:$0xff]  ;;  %360 = vmatpush.msra.mxu3 %v222_v18  ;;  %v44_v37 = vadd.f32 %v43_v25, %v42_v14  ;;  %v50_v38 = vadd.f32 %v49_v26, %v48_v15  ;;  %v85_v39 = vrot.slane %v84_v27, 2  ;;  %v220_v41 = vld [vmem:[%s823_s1 + $0x188] sm:$0xff]  ;;  %v246_v46 = vld [vmem:[%s823_s1 + $0x258] sm:$0xff]  ;;  %s455_s11 = smov [#allocation3]  }
  0x26   :  { %v263_v35 = vld [vmem:[%s823_s1 + $0x2e0] sm:$0xff]  ;;  %vm129_vm1 = vcmask 1045508   ;;  %370 = vmatpush.msrb.mxu0 %v248_v11  ;;  %v56_v42 = vadd.f32 %v55_v30, %v54_v19  ;;  %v74_v43 = vadd.f32 %v73_v31, %v72_v20  ;;  %v91_v45 = vrot.slane %v90_v33, 2  ;;  %v262_v47 = vld [vmem:[%s823_s1 + $0x2d8] sm:$0xff]  ;;  %342 = vmatpush.msra.mxu2 %v204_v28  ;;  %v245_v58 = vld [vmem:[%s823_s1 + $0x250] sm:$0xff]  ;;  %s414_s12 = sshll.u32 %s455_s11, 4  ;;  %s415_s12 = int_to_ptr.vmem [resolvable:$true] %s414_s12 }
  0x27   :  { %390 = vmatpush.msrb.mxu1 %v264_v23  ;;  %v203_v40 = vld [vmem:[%s823_s1 + $0x100] sm:$0xff]  ;;  %v80_v44 = vadd.f32 %v79_v32, %v78_v21  ;;  %vm131_vm2 = vcmask 1043456   ;;  %361 = vmatpush.msra.mxu3 %v221_v29  ;;  %v39_v48 = vrot.slane %v38_v36, 1  ;;  %v45_v49 = vrot.slane %v44_v37, 1  ;;  %v261_v59 = vld [vmem:[%s823_s1 + $0x2d0] sm:$0xff]  ;;  %v26_v0 = vld [vmem:[%s822_s0 + $0x28] sm:$0xff] }
  0x28   :  { %v51_v50 = vrot.slane %v50_v38, 1  ;;  %v86_v51 = vadd.f32 %v85_v39, %v84_v27  ;;  %371 = vmatpush.msrb.mxu0 %v247_v34  ;;  %v57_v52 = vrot.slane %v56_v42, 1  ;;  %v75_v53 = vrot.slane %v74_v43, 1  ;;  %v219_v56 = vld [vmem:[%s823_s1 + $0x180] sm:$0xff]  ;;  %343 = vmatpush.msra.mxu2 %v203_v40  ;;  %v31_v5 = vld [vmem:[%s822_s0 + $0x50] sm:$0xff]  ;;  %v244_v6 = vld [vmem:[%s823_s1 + $0x248] sm:$0xff] }
  0x29   :  { %391 = vmatpush.msrb.mxu1 %v263_v35  ;;  %v81_v54 = vrot.slane %v80_v44, 1  ;;  %v92_v55 = vadd.f32 %v91_v45, %v90_v33  ;;  %v25_v57 = vld [vmem:[%s822_s0 + $0x20] sm:$0xff]  ;;  %362 = vmatpush.msra.mxu3 %v220_v41  ;;  %v40_v60 = vadd.f32 %v39_v48, %v38_v36  ;;  %v46_v61 = vadd.f32 %v45_v49, %v44_v37  ;;  %v260_v7 = vld [vmem:[%s823_s1 + $0x2c8] sm:$0xff]  ;;  %v32_v15 = vld [vmem:[%s822_s0 + $0x58] sm:$0xff]  ;;  %s416_s15 = sshll.u32 %s825_s3, 4  ;;  %s417_s15 = int_to_ptr.hbm [resolvable:$true] %s416_s15 }
  0x2a   :  { %v52_v62 = vadd.f32 %v51_v50, %v50_v38  ;;  %v87_v63 = vrot.slane %v86_v51, 1  ;;  %372 = vmatpush.msrb.mxu0 %v246_v46  ;;  %v58_v1 = vadd.f32 %v57_v52, %v56_v42  ;;  %v76_v2 = vadd.f32 %v75_v53, %v74_v43  ;;  %v243_v17 = vld [vmem:[%s823_s1 + $0x240] sm:$0xff]  ;;  %v242_v27 = vld [vmem:[%s823_s1 + $0x238] sm:$0xff]  ;;  %v241_v35 = vld [vmem:[%s823_s1 + $0x230] sm:$0xff] }
  0x2b   :  { %392 = vmatpush.msrb.mxu1 %v262_v47  ;;  %v82_v3 = vadd.f32 %v81_v54, %v80_v44  ;;  %v93_v4 = vrot.slane %v92_v55, 1  ;;  %v119_v9 = vrot.slane %v46_v61, 6  ;;  %363 = vmatpush.msra.mxu3 %v219_v56  ;;  %v59_v11 = vrot.slane %v25_v57, 4  ;;  %v259_v18 = vld [vmem:[%s823_s1 + $0x2c0] sm:$0xff]  ;;  %v258_v28 = vld [vmem:[%s823_s1 + $0x2b8] sm:$0xff]  ;;  %v257_v36 = vld [vmem:[%s823_s1 + $0x2b0] sm:$0xff] }
  0x2c   :  { %v88_v8 = vadd.f32 %v87_v63, %v86_v51  ;;  %v120_v10 = vrot.slane %v52_v62, 4  ;;  %373 = vmatpush.msrb.mxu0 %v245_v58  ;;  %v121_v13 = vrot.slane %v58_v1, 2  ;;  %v65_v16 = vrot.slane %v26_v0, 4  ;;  %v240_v43 = vld [vmem:[%s823_s1 + $0x228] sm:$0xff]  ;;  %v239_v50 = vld [vmem:[%s823_s1 + $0x220] sm:$0xff]  ;;  %v238_v58 = vld [vmem:[%s823_s1 + $0x218] sm:$0xff] }
  0x2d   :  { %393 = vmatpush.msrb.mxu1 %v261_v59  ;;  %v94_v12 = vadd.f32 %v93_v4, %v92_v55  ;;  %v123_v14 = vrot.slane %v82_v3, 6  ;;  %v128_v20 = vsel %vm127_vm0, %v40_v60, %v119_v9  ;;  %v60_v21 = vadd.f32 %v59_v11, %v25_v57  ;;  %v256_v44 = vld [vmem:[%s823_s1 + $0x2a8] sm:$0xff]  ;;  %v255_v51 = vld [vmem:[%s823_s1 + $0x2a0] sm:$0xff]  ;;  %v254_v59 = vld [vmem:[%s823_s1 + $0x298] sm:$0xff] }
  0x2e   :  { %v124_v19 = vrot.slane %v88_v8, 4  ;;  %v95_v22 = vrot.slane %v31_v5, 4  ;;  %374 = vmatpush.msrb.mxu0 %v244_v6  ;;  %v130_v24 = vsel %vm129_vm1, %v120_v10, %v121_v13  ;;  %v66_v26 = vadd.f32 %v65_v16, %v26_v0  ;;  %v237_v61 = vld [vmem:[%s823_s1 + $0x210] sm:$0xff]  ;;  %v236_v4 = vld [vmem:[%s823_s1 + $0x208] sm:$0xff]  ;;  %v251_v10 = vld [vmem:[%s823_s1 + $0x280] sm:$0xff] }
  0x2f   :  { %394 = vmatpush.msrb.mxu1 %v260_v7  ;;  %v125_v23 = vrot.slane %v94_v12, 2  ;;  %v134_v25 = vsel %vm127_vm0, %v76_v2, %v123_v14  ;;  %v61_v29 = vrot.slane %v60_v21, 2  ;;  %v101_v31 = vrot.slane %v32_v15, 4  ;;  %v253_v62 = vld [vmem:[%s823_s1 + $0x290] sm:$0xff]  ;;  %v235_v7 = vld [vmem:[%s823_s1 + $0x200] sm:$0xff] }
  0x30   :  { %v96_v30 = vadd.f32 %v95_v22, %v31_v5  ;;  %375 = vmatpush.msrb.mxu0 %v243_v17  ;;  %v132_v32 = vsel %vm131_vm2, %v128_v20, %v130_v24  ;;  %vm143_vm3 = vcmask 1041409   ;;  %v67_v34 = vrot.slane %v66_v26, 2  ;;  %v252_v5 = vld [vmem:[%s823_s1 + $0x288] sm:$0xff]  ;;  %v34_v13 = vld [vmem:[#allocation2 + $0x8] sm:$0xf] }
  0x31   :  { %395 = vmatpush.msrb.mxu1 %v259_v18  ;;  %v135_v33 = vsel %vm129_vm1, %v124_v19, %v125_v23  ;;  %v62_v38 = vadd.f32 %v61_v29, %v60_v21  ;;  %v102_v40 = vadd.f32 %v101_v31, %v32_v15  ;;  %vm145_vm4 = vcmask 1043459  }
  0x32   :  { %v136_v37 = vsel %vm131_vm2, %v134_v25, %v135_v33  ;;  %v97_v39 = vrot.slane %v96_v30, 2  ;;  %376 = vmatpush.msrb.mxu0 %v242_v27  ;;  %v68_v42 = vadd.f32 %v67_v34, %v66_v26  ;;  %vm147_vm5 = vcmask 1045509   ;;  %v427_v26 = vld [vmem:[%s824_s2] ss:$0 sm:$0xff] }
  0x33   :  { %396 = vmatpush.msrb.mxu1 %v258_v28  ;;  %v142_v41 = vrot.slane %v136_v37, 7  ;;  %v103_v46 = vrot.slane %v102_v40, 2  ;;  %vm149_vm6 = vcmask 1047559   ;;  %v63_v52 = vrot.slane %v62_v38, 1 }
  0x34   :  { %v98_v45 = vadd.f32 %v97_v39, %v96_v30  ;;  %377 = vmatpush.msrb.mxu0 %v241_v35  ;;  %v69_v48 = vrot.slane %v68_v42, 1 }
  0x35   :  { %397 = vmatpush.msrb.mxu1 %v257_v36  ;;  %v144_v47 = vsel %vm143_vm3, %v142_v41, %v132_v32  ;;  %v104_v54 = vadd.f32 %v103_v46, %v102_v40  ;;  %v64_v63 = vadd.f32 %v63_v52, %v62_v38 }
  0x36   :  { %v146_v49 = vsel %vm145_vm4, %v142_v41, %v144_v47  ;;  %v99_v53 = vrot.slane %v98_v45, 1  ;;  %378 = vmatpush.msrb.mxu0 %v240_v43  ;;  %v70_v56 = vadd.f32 %v69_v48, %v68_v42 }
  0x37   :  { %v148_v55 = vsel %vm147_vm5, %v142_v41, %v146_v49  ;;  %398 = vmatpush.msrb.mxu1 %v256_v44  ;;  %v105_v60 = vrot.slane %v104_v54, 1 }
  0x38   :  { %v150_v57 = vsel %vm149_vm6, %v142_v41, %v148_v55  ;;  %379 = vmatpush.msrb.mxu0 %v239_v50  ;;  %v100_v0 = vadd.f32 %v99_v53, %v98_v45  ;;  %v122_v2 = vrot.slane %v70_v56, 6 }
  0x39   :  { %399 = vmatpush.msrb.mxu1 %v255_v51  ;;  %v106_v1 = vadd.f32 %v105_v60, %v104_v54  ;;  %v169_v3 = vmul.f32 0.125, %v150_v57 }
  0x3a   :  { %380 = vmatpush.msrb.mxu0 %v238_v58  ;;  %v133_v8 = vsel %vm127_vm0, %v64_v63, %v122_v2 }
  0x3b   :  { %400 = vmatpush.msrb.mxu1 %v254_v59  ;;  %v126_v6 = vrot.slane %v106_v1, 6  ;;  %273 = vst [vmem:[#allocation1] ss:$4 sm:$0xff] %v169_v3 }
  0x3c   :  { %381 = vmatpush.msrb.mxu0 %v237_v61 }
  0x3d   :  { %401 = vmatpush.msrb.mxu1 %v253_v62  ;;  %v137_v9 = vsel %vm127_vm0, %v100_v0, %v126_v6 }
  0x3e   :  { %382 = vmatpush.msrb.mxu0 %v236_v4  ;;  %v153_v11 = vrot.slane %v137_v9, 7 }
  0x3f   :  { %402 = vmatpush.msrb.mxu1 %v252_v5 }
  0x40   :  { %383 = vmatpush.msrb.mxu0 %v235_v7  ;;  %v154_v12 = vsel %vm143_vm3, %v153_v11, %v133_v8 }
  0x41   :  { %403 = vmatpush.msrb.mxu1 %v251_v10  ;;  %v155_v14 = vsel %vm145_vm4, %v153_v11, %v154_v12 }
  0x42   :  { %v156_v15 = vsel %vm147_vm5, %v153_v11, %v155_v14  ;;  %v278_v16 = vld.sshfl [vmem:[#allocation1 + $0x10] sm:$0xff pattern:$0x73625140]  ;;  %v276_v17 = vld.sshfl [vmem:[#allocation1] sm:$0xff pattern:$0x73625140] }
  0x43   :  { %v157_v18 = vsel %vm149_vm6, %v153_v11, %v156_v15  ;;  %344 = vmatmul.f32.vlgmr.msra.gmra.mxu2 %v278_v16  ;;  %304 = vmatmul.f32.vlgmr.msra.gmra.mxu0 %v276_v17  ;;  %v279_v19 = vld.sshfl [vmem:[#allocation1 + $0x18] sm:$0xff pattern:$0x73625140]  ;;  %v277_v20 = vld.sshfl [vmem:[#allocation1 + $0x8] sm:$0xff pattern:$0x73625140] }
  0x44   :  { %v161_v21 = vadd.f32 %v157_v18, %v34_v13  ;;  %364 = vmatmul.f32.vlgmr.msra.gmra.mxu3 %v279_v19  ;;  %324 = vmatmul.f32.vlgmr.msra.gmra.mxu1 %v277_v20 }
  0x46   :  { %163 = vst [vmem:[#allocation2 + $0x8] sm:$0xf] %v161_v21 }
  0x4d   :  { %v168_v22 = vld [vmem:[#allocation2 + $0x8] sm:$0xf] }
  0x4e   :  { %v170_v23 = vmul.f32 0.125, %v168_v22 }
  0x50   :  { %275 = vst [vmem:[#allocation1 + $0x20] ss:$4 sm:$0xff] %v170_v23 }
  0x57   :  { %v280_v24 = vld.sshfl [vmem:[#allocation1 + $0x20] sm:$0xff pattern:$0x73625140]  ;;  %v281_v25 = vld.sshfl [vmem:[#allocation1 + $0x28] sm:$0xff pattern:$0x73625140] }
  0x58   :  { %384 = vmatmul.f32.vlgmr.msrb.gmra.mxu0 %v280_v24  ;;  %404 = vmatmul.f32.vlgmr.msrb.gmra.mxu1 %v281_v25 }
  0xc0   :  { %v305_v27 = vpop.f32.mrf.mxu0 }
  0xc1   :  { %v306_v28 = vadd.f32 %v427_v26, %v305_v27  ;;  %v325_v29 = vpop.f32.mrf.mxu1 }
  0xc3   :  { %v326_v30 = vadd.f32 %v325_v29, %v306_v28 }
  0xc6   :  { %v345_v31 = vpop.f32.mrf.mxu2 }
  0xc7   :  { %v346_v32 = vadd.f32 %v345_v31, %v326_v30  ;;  %v365_v33 = vpop.f32.mrf.mxu3 }
  0xc9   :  { %v366_v34 = vadd.f32 %v365_v33, %v346_v32 }
  0xd5   :  { %v385_v35 = vpop.f32.mrf.mxu0  ;;  %v405_v36 = vpop.f32.mrf.mxu1 }
  0xd6   :  { %v386_v37 = vadd.f32 %v385_v35, %v366_v34 }
  0xd8   :  { %v406_v38 = vadd.f32 %v405_v36, %v386_v37 }
  0xda   :  { %408 = vst [vmem:[#allocation3] sm:$0x3] %v406_v38 }
  0xdb   :  { %419 = dma.vmem_to_hbm [thread:$0]  %s415_s12, 32, %s417_s15, [#allocation4]  }
  0xdc   :  { %452 = dma.done.wait [#allocation4], 32  }
  0xdd   :  { %453 = vsyncadd [#allocation4], 4294967264 }
  0xde   :  { %424 = vsyncpa [#allocation4], 1 }

</bundles_post_ra>
